<compile_context>
chip_gen: v7x
topology: tpu7x:2x2x1
jax: 0.10.0
libtpu: 0.0.40
codegen_flags: <defaults>
</compile_context>

<pallas_src>
import jax
import jax.numpy as jnp
from jax.experimental import pallas as pl
from jax.experimental.pallas import tpu as pltpu

EPS = 1e-5
LANE = 128
SUBLANE = 8


def _round_up(n, m):
    return ((n + m - 1) // m) * m


def _make_kernel(b_real, b_pad, ph1, ph2, pout):
    inv_b = 1.0 / float(b_real)

    def bn_relu(h, gamma, beta):
        # Training-mode BatchNorm1d over the batch axis (real rows only: padded rows of h
        # are zero, so the sum / sum-of-squares moments divided by b_real are exact).
        # Affine is fused into one per-feature scale/shift. Padded (all-zero) feature
        # columns stay zero because the padded gamma/beta are zero (scale = shift = 0).
        s1 = jnp.sum(h, axis=0, keepdims=True)                    # (1, N)
        s2 = jnp.sum(h * h, axis=0, keepdims=True)                # (1, N)
        mu = s1 * inv_b
        var = jnp.maximum(s2 * inv_b - mu * mu, 0.0)
        scale = gamma * jax.lax.rsqrt(var + EPS)                  # (1, N)
        shift = beta - mu * scale                                 # (1, N)
        return jnp.maximum(h * scale + shift, 0.0)

    def kernel(x_ref, w1_ref, w2_ref, w3_ref, p_ref, o_ref):
        # Packed per-feature params (f32): rows 0..4 = gamma1, beta1, gamma2, beta2, b3.
        p = p_ref[...]
        g1, be1 = p[0:1, :ph1], p[1:2, :ph1]
        g2, be2 = p[2:3, :ph2], p[3:4, :ph2]
        b3 = p[4:5, :pout]

        # layer1: Linear (bias dropped, cancelled by BN) -> BN -> ReLU
        h1 = jnp.dot(x_ref[...], w1_ref[...], preferred_element_type=jnp.float32)
        h1 = bn_relu(h1, g1, be1)

        # Re-zero padded batch rows (BN shift made them nonzero) so layer-2 stats stay
        # exact. Static no-op when B is already a multiple of 8.
        if b_pad != b_real:
            row_mask = (jax.lax.broadcasted_iota(jnp.int32, (b_pad, 1), 0)
                        < b_real).astype(jnp.float32)
            h1 = h1 * row_mask

        # layer2: Linear (bias dropped) -> BN -> ReLU
        h2 = jnp.dot(h1.astype(jnp.bfloat16), w2_ref[...],
                     preferred_element_type=jnp.float32)
        h2 = bn_relu(h2, g2, be2)

        # layer3: Linear (bias kept). Padded batch rows are garbage here but are sliced
        # off in the wrapper, so no extra mask is needed.
        out = jnp.dot(h2.astype(jnp.bfloat16), w3_ref[...],
                      preferred_element_type=jnp.float32) + b3
        o_ref[...] = out.astype(o_ref.dtype)

    return kernel


def batch_net_forward(x, params):
    (w1, _b1, g1, be1, w2, _b2, g2, be2, w3, b3) = params
    B, in_dim = x.shape
    h1d, h2d, out_dim = w1.shape[1], w2.shape[1], w3.shape[1]
    pin, ph1, ph2, pout = (_round_up(d, LANE) for d in (in_dim, h1d, h2d, out_dim))
    b_pad = _round_up(B, SUBLANE)
    pmax = max(ph1, ph2, pout)

    def pad2(a, rows, cols):
        return jnp.pad(a, ((0, rows - a.shape[0]), (0, cols - a.shape[1])))

    # Lane-dense, bf16 matmul operands (f32 accumulate inside the kernel).
    x_p = pad2(x, b_pad, pin).astype(jnp.bfloat16)
    w1_p = pad2(w1, pin, ph1).astype(jnp.bfloat16)
    w2_p = pad2(w2, ph1, ph2).astype(jnp.bfloat16)
    w3_p = pad2(w3, ph2, pout).astype(jnp.bfloat16)

    # Pack all per-feature vectors into one (8, pmax) f32 block: one DMA instead of six.
    packed = jnp.zeros((8, pmax), jnp.float32)
    packed = packed.at[0, :h1d].set(g1[0])
    packed = packed.at[1, :h1d].set(be1[0])
    packed = packed.at[2, :h2d].set(g2[0])
    packed = packed.at[3, :h2d].set(be2[0])
    packed = packed.at[4, :out_dim].set(b3[0])

    vmem = pl.BlockSpec(memory_space=pltpu.MemorySpace.VMEM)
    out_p = pl.pallas_call(
        _make_kernel(B, b_pad, ph1, ph2, pout),
        out_shape=jax.ShapeDtypeStruct((b_pad, pout), jnp.float32),
        in_specs=[vmem] * 5,
        out_specs=vmem,
    )(x_p, w1_p, w2_p, w3_p, packed)
    return out_p[:B, :out_dim]


def init_params(key, in_dim, n_hidden_1, n_hidden_2, out_dim):
    ks = jax.random.split(key, 6)

    def linear(kw, kb, fan_in, fan_out):
        bound = 1.0 / jnp.sqrt(fan_in)
        w = jax.random.uniform(kw, (fan_in, fan_out), jnp.float32, -bound, bound)
        b = jax.random.uniform(kb, (1, fan_out), jnp.float32, -bound, bound)
        return w, b

    w1, b1 = linear(ks[0], ks[1], in_dim, n_hidden_1)
    w2, b2 = linear(ks[2], ks[3], n_hidden_1, n_hidden_2)
    w3, b3 = linear(ks[4], ks[5], n_hidden_2, out_dim)

    # BatchNorm1d affine params (PyTorch default init: gamma=1, beta=0).
    g1 = jnp.ones((1, n_hidden_1), jnp.float32)
    be1 = jnp.zeros((1, n_hidden_1), jnp.float32)
    g2 = jnp.ones((1, n_hidden_2), jnp.float32)
    be2 = jnp.zeros((1, n_hidden_2), jnp.float32)

    return (w1, b1, g1, be1, w2, b2, g2, be2, w3, b3)


def reference_forward(x, params, mxu_bf16=False):
    # Pure-JAX reference with full PyTorch semantics (biases included).
    # mxu_bf16=True mimics the kernel's bf16-input / f32-accumulate matmuls for a
    # tight numerical comparison.
    (w1, b1, g1, be1, w2, b2, g2, be2, w3, b3) = params

    def cast(a):
        return a.astype(jnp.bfloat16) if mxu_bf16 else a

    def dot(a, b):
        return jnp.dot(cast(a), cast(b), preferred_element_type=jnp.float32)

    def bn_relu(h, g, be):
        mu = jnp.mean(h, axis=0, keepdims=True)
        var = jnp.mean((h - mu) ** 2, axis=0, keepdims=True)
        return jnp.maximum((h - mu) / jnp.sqrt(var + EPS) * g + be, 0.0)

    h1 = bn_relu(dot(x, w1) + b1, g1, be1)
    h2 = bn_relu(dot(h1, w2) + b2, g2, be2)
    return dot(h2, w3) + b3


if __name__ == "__main__":
    in_dim, n_hidden_1, n_hidden_2, out_dim = 16, 32, 32, 8
    batch = 6  # deliberately not a multiple of 8: exercises the batch-padding + mask path

    key = jax.random.PRNGKey(0)
    kx, kp = jax.random.split(key)
    x = jax.random.normal(kx, (batch, in_dim), jnp.float32)
    params = init_params(kp, in_dim, n_hidden_1, n_hidden_2, out_dim)

    out = jax.block_until_ready(batch_net_forward(x, params))
    assert out.shape == (batch, out_dim)

    # Tight check against a reference that uses the same bf16-matmul / f32-BN scheme.
    ref_bf16 = reference_forward(x, params, mxu_bf16=True)
    assert jnp.allclose(out, ref_bf16, atol=1e-2, rtol=1e-2), "mismatch vs bf16-matmul reference"

    # Loose check against the full-f32 PyTorch-equivalent reference (bf16 rounding slack).
    ref_f32 = reference_forward(x, params, mxu_bf16=False)
    assert jnp.allclose(out, ref_f32, atol=1e-1, rtol=1e-1), "mismatch vs f32 reference"

    print("KERNEL_OK")
</pallas_src>

<mosaic_0001>
module attributes {stable_mosaic.version = 11 : i64} {
  func.func @kernel(%arg0: memref<8x128xbf16, #tpu.memory_space<vmem>>, %arg1: memref<128x128xbf16, #tpu.memory_space<vmem>>, %arg2: memref<128x128xbf16, #tpu.memory_space<vmem>>, %arg3: memref<128x128xbf16, #tpu.memory_space<vmem>>, %arg4: memref<8x128xf32, #tpu.memory_space<vmem>>, %arg5: memref<8x128xf32, #tpu.memory_space<vmem>>) attributes {dimension_semantics = [], scalar_prefetch = 0 : i64, scratch_operands = 0 : i64, tpu.core_type = #tpu.core_type<tc>} {
    %c0 = arith.constant 0 : index
    %c0_0 = arith.constant 0 : index
    %0 = vector.load %arg4[%c0, %c0_0] : memref<8x128xf32, #tpu.memory_space<vmem>>, vector<8x128xf32>
    %1 = vector.extract_strided_slice %0 {offsets = [0, 0], sizes = [1, 128], strides = [1, 1]} : vector<8x128xf32> to vector<1x128xf32>
    %2 = vector.extract_strided_slice %0 {offsets = [1, 0], sizes = [1, 128], strides = [1, 1]} : vector<8x128xf32> to vector<1x128xf32>
    %3 = vector.extract_strided_slice %0 {offsets = [2, 0], sizes = [1, 128], strides = [1, 1]} : vector<8x128xf32> to vector<1x128xf32>
    %4 = vector.extract_strided_slice %0 {offsets = [3, 0], sizes = [1, 128], strides = [1, 1]} : vector<8x128xf32> to vector<1x128xf32>
    %5 = vector.extract_strided_slice %0 {offsets = [4, 0], sizes = [1, 128], strides = [1, 1]} : vector<8x128xf32> to vector<1x128xf32>
    %c0_1 = arith.constant 0 : index
    %c0_2 = arith.constant 0 : index
    %6 = vector.load %arg0[%c0_1, %c0_2] : memref<8x128xbf16, #tpu.memory_space<vmem>>, vector<8x128xbf16>
    %c0_3 = arith.constant 0 : index
    %c0_4 = arith.constant 0 : index
    %7 = vector.load %arg1[%c0_3, %c0_4] : memref<128x128xbf16, #tpu.memory_space<vmem>>, vector<128x128xbf16>
    %cst = arith.constant dense<0.000000e+00> : vector<8x128xf32>
    %8 = tpu.matmul %6, %7, %cst {dimension_numbers = #tpu.dot_dimension_numbers<[1], [0], [0], [1], [0, 0, 1, 1], [], []>} : vector<8x128xbf16>, vector<128x128xbf16>, vector<8x128xf32> -> vector<8x128xf32>
    %cst_5 = arith.constant dense<0.000000e+00> : vector<128xf32>
    %9 = vector.multi_reduction <add>, %8, %cst_5 [0] : vector<8x128xf32> to vector<128xf32>
    %10 = vector.shape_cast %9 : vector<128xf32> to vector<1x128xf32>
    %11 = arith.mulf %8, %8 : vector<8x128xf32>
    %cst_6 = arith.constant dense<0.000000e+00> : vector<128xf32>
    %12 = vector.multi_reduction <add>, %11, %cst_6 [0] : vector<8x128xf32> to vector<128xf32>
    %13 = vector.shape_cast %12 : vector<128xf32> to vector<1x128xf32>
    %cst_7 = arith.constant 0.166666672 : f32
    %14 = vector.broadcast %cst_7 : f32 to vector<1x128xf32>
    %15 = arith.mulf %10, %14 : vector<1x128xf32>
    %cst_8 = arith.constant 0.166666672 : f32
    %16 = vector.broadcast %cst_8 : f32 to vector<1x128xf32>
    %17 = arith.mulf %13, %16 : vector<1x128xf32>
    %18 = arith.mulf %15, %15 : vector<1x128xf32>
    %19 = arith.subf %17, %18 : vector<1x128xf32>
    %cst_9 = arith.constant 0.000000e+00 : f32
    %20 = vector.broadcast %cst_9 : f32 to vector<1x128xf32>
    %21 = arith.maximumf %19, %20 : vector<1x128xf32>
    %cst_10 = arith.constant 9.99999974E-6 : f32
    %22 = vector.broadcast %cst_10 : f32 to vector<1x128xf32>
    %23 = arith.addf %21, %22 : vector<1x128xf32>
    %24 = math.rsqrt %23 : vector<1x128xf32>
    %25 = arith.mulf %1, %24 : vector<1x128xf32>
    %26 = arith.mulf %15, %25 : vector<1x128xf32>
    %27 = arith.subf %2, %26 : vector<1x128xf32>
    %28 = vector.broadcast %25 : vector<1x128xf32> to vector<8x128xf32>
    %29 = arith.mulf %8, %28 : vector<8x128xf32>
    %30 = vector.broadcast %27 : vector<1x128xf32> to vector<8x128xf32>
    %31 = arith.addf %29, %30 : vector<8x128xf32>
    %cst_11 = arith.constant 0.000000e+00 : f32
    %32 = vector.broadcast %cst_11 : f32 to vector<8x128xf32>
    %33 = arith.maximumf %31, %32 : vector<8x128xf32>
    %34 = tpu.iota {dimensions = array<i32: 0>} : vector<8x1xi32>
    %c6_i32 = arith.constant 6 : i32
    %35 = vector.broadcast %c6_i32 : i32 to vector<8x1xi32>
    %36 = arith.cmpi slt, %34, %35 : vector<8x1xi32>
    %37 = arith.extui %36 : vector<8x1xi1> to vector<8x1xi32>
    %38 = arith.sitofp %37 : vector<8x1xi32> to vector<8x1xf32>
    %39 = vector.broadcast %38 : vector<8x1xf32> to vector<8x128xf32>
    %40 = arith.mulf %33, %39 : vector<8x128xf32>
    %41 = arith.truncf %40 : vector<8x128xf32> to vector<8x128xbf16>
    %c0_12 = arith.constant 0 : index
    %c0_13 = arith.constant 0 : index
    %42 = vector.load %arg2[%c0_12, %c0_13] : memref<128x128xbf16, #tpu.memory_space<vmem>>, vector<128x128xbf16>
    %cst_14 = arith.constant dense<0.000000e+00> : vector<8x128xf32>
    %43 = tpu.matmul %41, %42, %cst_14 {dimension_numbers = #tpu.dot_dimension_numbers<[1], [0], [0], [1], [0, 0, 1, 1], [], []>} : vector<8x128xbf16>, vector<128x128xbf16>, vector<8x128xf32> -> vector<8x128xf32>
    %cst_15 = arith.constant dense<0.000000e+00> : vector<128xf32>
    %44 = vector.multi_reduction <add>, %43, %cst_15 [0] : vector<8x128xf32> to vector<128xf32>
    %45 = vector.shape_cast %44 : vector<128xf32> to vector<1x128xf32>
    %46 = arith.mulf %43, %43 : vector<8x128xf32>
    %cst_16 = arith.constant dense<0.000000e+00> : vector<128xf32>
    %47 = vector.multi_reduction <add>, %46, %cst_16 [0] : vector<8x128xf32> to vector<128xf32>
    %48 = vector.shape_cast %47 : vector<128xf32> to vector<1x128xf32>
    %cst_17 = arith.constant 0.166666672 : f32
    %49 = vector.broadcast %cst_17 : f32 to vector<1x128xf32>
    %50 = arith.mulf %45, %49 : vector<1x128xf32>
    %cst_18 = arith.constant 0.166666672 : f32
    %51 = vector.broadcast %cst_18 : f32 to vector<1x128xf32>
    %52 = arith.mulf %48, %51 : vector<1x128xf32>
    %53 = arith.mulf %50, %50 : vector<1x128xf32>
    %54 = arith.subf %52, %53 : vector<1x128xf32>
    %cst_19 = arith.constant 0.000000e+00 : f32
    %55 = vector.broadcast %cst_19 : f32 to vector<1x128xf32>
    %56 = arith.maximumf %54, %55 : vector<1x128xf32>
    %cst_20 = arith.constant 9.99999974E-6 : f32
    %57 = vector.broadcast %cst_20 : f32 to vector<1x128xf32>
    %58 = arith.addf %56, %57 : vector<1x128xf32>
    %59 = math.rsqrt %58 : vector<1x128xf32>
    %60 = arith.mulf %3, %59 : vector<1x128xf32>
    %61 = arith.mulf %50, %60 : vector<1x128xf32>
    %62 = arith.subf %4, %61 : vector<1x128xf32>
    %63 = vector.broadcast %60 : vector<1x128xf32> to vector<8x128xf32>
    %64 = arith.mulf %43, %63 : vector<8x128xf32>
    %65 = vector.broadcast %62 : vector<1x128xf32> to vector<8x128xf32>
    %66 = arith.addf %64, %65 : vector<8x128xf32>
    %cst_21 = arith.constant 0.000000e+00 : f32
    %67 = vector.broadcast %cst_21 : f32 to vector<8x128xf32>
    %68 = arith.maximumf %66, %67 : vector<8x128xf32>
    %69 = arith.truncf %68 : vector<8x128xf32> to vector<8x128xbf16>
    %c0_22 = arith.constant 0 : index
    %c0_23 = arith.constant 0 : index
    %70 = vector.load %arg3[%c0_22, %c0_23] : memref<128x128xbf16, #tpu.memory_space<vmem>>, vector<128x128xbf16>
    %cst_24 = arith.constant dense<0.000000e+00> : vector<8x128xf32>
    %71 = tpu.matmul %69, %70, %cst_24 {dimension_numbers = #tpu.dot_dimension_numbers<[1], [0], [0], [1], [0, 0, 1, 1], [], []>} : vector<8x128xbf16>, vector<128x128xbf16>, vector<8x128xf32> -> vector<8x128xf32>
    %72 = vector.broadcast %5 : vector<1x128xf32> to vector<8x128xf32>
    %73 = arith.addf %71, %72 : vector<8x128xf32>
    %c0_25 = arith.constant 0 : index
    %c0_26 = arith.constant 0 : index
    %74 = vector.load %arg5[%c0_25, %c0_26] : memref<8x128xf32, #tpu.memory_space<vmem>>, vector<8x128xf32>
    tpu.vector_store %arg5[%c0_25, %c0_26], %73 {strides = array<i32>} : memref<8x128xf32, #tpu.memory_space<vmem>>, vector<8x128xf32>,
    return
  }
}

</mosaic_0001>

<bundles_post_ra>
// kernel: tpu_custom_call.1
= control target key start
LH: loop header
LB: loop body
LE: loop exit
PB: predicated region body
PF: predicated region fallthrough
CT: control target
= control target key end

     0   :  { %10 = vsyncpa [#allocation3], 0  ;;  %s917_s0 = inlined_call_operand.hbm [shape: bf16[8,128], index: 0, kind: input, shape index: {}]   ;;  %s918_s1 = inlined_call_operand.hbm [shape: bf16[128,128], index: 1, kind: input, shape index: {}]   ;;  %s919_s2 = inlined_call_operand.hbm [shape: bf16[128,128], index: 2, kind: input, shape index: {}]   ;;  %s920_s3 = inlined_call_operand.hbm [shape: bf16[128,128], index: 3, kind: input, shape index: {}]   ;;  %s921_s4 = inlined_call_operand.vmem [shape: f32[8,128], index: 4, kind: input, shape index: {}]   ;;  %s922_s5 = inlined_call_operand.hbm [shape: f32[8,128], index: 5, kind: output, shape index: {}]  }
   0x1   :  { %11 = vsyncpa [#allocation6], 0 }
   0x2   :  { %12 = vsyncpa [#allocation9], 0 }
   0x3   :  { %13 = vsyncpa [#allocation4], 0  ;;  %s760_s18 = smov [#allocation5]   ;;  %s642_s22 = scalar_lea.hbm %s918_s1, 1024 }
   0x4   :  { %s29_s19 = sshll.u32 %s760_s18, 4  ;;  %p643_p0 = scmp.ne.s32.totalorder %s918_s1, %s642_s22  ;;  %s30_s19 = int_to_ptr.vmem [resolvable:$true] %s29_s19 }
   0x5   :  { %p646_p1 = scmp.lt.u32.totalorder %s642_s22, %s918_s1 }
   0x7   :  { %p648_p2 = pnand %p646_p1, %p643_p0 }
   0x9   :  { %651 = shalt.err (!%p648_p2)
}
   0xa   :  { %s652_s27 = scalar_lea.vmem %s30_s19, 1024  ;;  %p657_p4 = scmp.lt.s32.totalorder %s30_s19, %s30_s19 }
   0xb   :  { %p653_p3 = scmp.ne.s32.totalorder %s30_s19, %s652_s27  ;;  %p658_p5 = scmp.lt.s32.totalorder %s652_s27, %s652_s27 }
   0xd   :  { %p659_p6 = por %p658_p5, %p657_p4 }
   0xf   :  { %p660_p7 = pnand %p659_p6, %p653_p3 }
  0x11   :  { %663 = shalt.err (!%p660_p7)
}
  0x12   :  { %s761_s28 = smov 64   ;;  %s762_s29 = smov 4  }
  0x13   :  { %35 = dma.hbm_to_vmem [thread:$0]  %s918_s1, 1024, %s30_s19, [#allocation6], %s761_s28, %s761_s28, %s762_s29  }
  0x14   :  { %s763_s7 = smov [#allocation2]   ;;  %s764_s9 = smov [#allocation7]  }
  0x15   :  { %s20_s8 = sshll.u32 %s763_s7, 4  ;;  %s41_s10 = sshll.u32 %s764_s9, 4  ;;  %s21_s8 = int_to_ptr.vmem [resolvable:$true] %s20_s8  ;;  %s42_s10 = int_to_ptr.vmem [resolvable:$true] %s41_s10 }
  0x16   :  { %s664_s13 = scalar_lea.hbm %s917_s0, 64 }
  0x17   :  { %p665_p8 = scmp.ne.s32.totalorder %s917_s0, %s664_s13  ;;  %p668_p9 = scmp.lt.u32.totalorder %s664_s13, %s917_s0 }
  0x19   :  { %p670_p10 = pnand %p668_p9, %p665_p8 }
  0x1b   :  { %673 = shalt.err (!%p670_p10)
}
  0x1c   :  { %s674_s1 = scalar_lea.vmem %s21_s8, 64  ;;  %p679_p12 = scmp.lt.s32.totalorder %s21_s8, %s21_s8 }
  0x1d   :  { %p675_p11 = scmp.ne.s32.totalorder %s21_s8, %s674_s1  ;;  %p680_p13 = scmp.lt.s32.totalorder %s674_s1, %s674_s1 }
  0x1f   :  { %p681_p0 = por %p680_p13, %p679_p12 }
  0x21   :  { %p682_p1 = pnand %p681_p0, %p675_p11 }
  0x23   :  { %685 = shalt.err (!%p682_p1)
}
  0x24   :  { %23 = dma.hbm_to_vmem [thread:$0]  %s917_s0, 64, %s21_s8, [#allocation3]  }
  0x25   :  { %s686_s22 = scalar_lea.hbm %s919_s2, 1024 }
  0x26   :  { %p687_p2 = scmp.ne.s32.totalorder %s919_s2, %s686_s22  ;;  %p690_p3 = scmp.lt.u32.totalorder %s686_s22, %s919_s2 }
  0x28   :  { %p692_p4 = pnand %p690_p3, %p687_p2 }
  0x2a   :  { %695 = shalt.err (!%p692_p4)
}
  0x2b   :  { %s696_s27 = scalar_lea.vmem %s42_s10, 1024  ;;  %p701_p6 = scmp.lt.s32.totalorder %s42_s10, %s42_s10 }
  0x2c   :  { %p697_p5 = scmp.ne.s32.totalorder %s42_s10, %s696_s27  ;;  %p702_p7 = scmp.lt.s32.totalorder %s696_s27, %s696_s27 }
  0x2e   :  { %p703_p8 = por %p702_p7, %p701_p6 }
  0x30   :  { %p704_p9 = pnand %p703_p8, %p697_p5 }
  0x32   :  { %707 = shalt.err (!%p704_p9)
}
  0x33   :  { %47 = dma.hbm_to_vmem [thread:$0]  %s919_s2, 1024, %s42_s10, [#allocation6], %s761_s28, %s761_s28, %s762_s29  }
  0x34   :  { %s765_s6 = smov [#allocation8]   ;;  %s708_s11 = scalar_lea.hbm %s920_s3, 1024 }
  0x35   :  { %s53_s7 = sshll.u32 %s765_s6, 4  ;;  %p709_p10 = scmp.ne.s32.totalorder %s920_s3, %s708_s11  ;;  %s54_s7 = int_to_ptr.vmem [resolvable:$true] %s53_s7 }
  0x36   :  { %p712_p11 = scmp.lt.u32.totalorder %s708_s11, %s920_s3 }
  0x38   :  { %p714_p12 = pnand %p712_p11, %p709_p10 }
  0x3a   :  { %717 = shalt.err (!%p714_p12)
}
  0x3b   :  { %s718_s16 = scalar_lea.vmem %s54_s7, 1024  ;;  %p723_p0 = scmp.lt.s32.totalorder %s54_s7, %s54_s7 }
  0x3c   :  { %p719_p13 = scmp.ne.s32.totalorder %s54_s7, %s718_s16  ;;  %p724_p1 = scmp.lt.s32.totalorder %s718_s16, %s718_s16 }
  0x3e   :  { %p725_p2 = por %p724_p1, %p723_p0 }
  0x40   :  { %p726_p3 = pnand %p725_p2, %p719_p13 }
  0x42   :  { %729 = shalt.err (!%p726_p3)
}
  0x43   :  { %59 = dma.hbm_to_vmem [thread:$0]  %s920_s3, 1024, %s54_s7, [#allocation9], %s761_s28, %s761_s28, %s762_s29  }
  0x44   :  { %752 = dma.done.wait [#allocation3], 64  }
  0x45   :  { %753 = vsyncadd [#allocation3], 4294967232 }
  0x46   :  { %754 = dma.done.wait [#allocation6], 2048  }
  0x47   :  { %755 = vsyncadd [#allocation6], 4294965248 }
  0x48   :  { %756 = dma.done.wait [#allocation9], 1024  }
  0x49   :  { %757 = vsyncadd [#allocation9], 4294966272  ;;  %v766_v0 = vmov 0.0   ;;  %vm767_vm0 = vmmov 0   ;;  %v614_v1 = vld [vmem:[#allocation5] sm:$0xff]   ;;  %v615_v2 = vld [vmem:[#allocation5 + $0x8] sm:$0xff]   ;;  %v207_v41 = vlaneseq }
  0x4a   :  { %545 = vmatprep.subr.bf16.mxu0 %v766_v0  ;;  %561 = vmatprep.mubr.msk.bf16.mxu0 %vm767_vm0, %v766_v0  ;;  %v616_v3 = vld [vmem:[#allocation5 + $0x10] sm:$0xff]   ;;  %v617_v4 = vld [vmem:[#allocation5 + $0x18] sm:$0xff]   ;;  %v618_v5 = vld [vmem:[#allocation5 + $0x20] sm:$0xff]  }
  0x4b   :  { %565 = vmatprep.subr.bf16.mxu1 %v766_v0  ;;  %581 = vmatprep.mubr.msk.bf16.mxu1 %vm767_vm0, %v766_v0  ;;  %v619_v6 = vld [vmem:[#allocation5 + $0x28] sm:$0xff]   ;;  %v620_v7 = vld [vmem:[#allocation5 + $0x30] sm:$0xff]   ;;  %v621_v8 = vld [vmem:[#allocation5 + $0x38] sm:$0xff]   ;;  %v879_v42 = vshrl.u32 %v207_v41, 7 }
  0x4c   :  { %546 = vmatpush3.bf16.msra.mxu0 %v614_v1  ;;  %v76_v9 = vld [vmem:[#allocation2] sm:$0xf]  ;;  %v622_v10 = vld [vmem:[#allocation7] sm:$0xff]   ;;  %v623_v11 = vld [vmem:[#allocation7 + $0x8] sm:$0xff]  }
  0x4d   :  { %547 = vmatprep.subr.bf16.mxu0 %v766_v0  ;;  %566 = vmatpush3.bf16.msra.mxu1 %v622_v10  ;;  %v624_v12 = vld [vmem:[#allocation7 + $0x10] sm:$0xff]   ;;  %v625_v13 = vld [vmem:[#allocation7 + $0x18] sm:$0xff]   ;;  %v626_v14 = vld [vmem:[#allocation7 + $0x20] sm:$0xff]   ;;  %v209_v46 = vsub.s32 0, %v879_v42  ;;  %v214_v50 = vsub.s32 1, %v879_v42  ;;  %vm220_vm1 = vcmp.lt.s32.totalorder %v879_v42, 6 }
  0x4e   :  { %567 = vmatprep.subr.bf16.mxu1 %v766_v0  ;;  %v627_v15 = vld [vmem:[#allocation7 + $0x28] sm:$0xff]   ;;  %v628_v16 = vld [vmem:[#allocation7 + $0x30] sm:$0xff]   ;;  %v629_v17 = vld [vmem:[#allocation7 + $0x38] sm:$0xff]   ;;  %v501_v55 = vsel %vm220_vm1, 1.0, %v766_v0 }
  0x4f   :  { %v884_v43 = vld [vmem:[%s921_s4] sm:$0xff]  ;;  %v630_v59 = vld [vmem:[#allocation8] sm:$0xff]   ;;  %v631_v60 = vld [vmem:[#allocation8 + $0x8] sm:$0xff]   ;;  %s768_s4 = smov [#allocation10]  }
  0x50   :  { %548 = vmatpush3.bf16.msra.mxu0 %v615_v2  ;;  %v632_v61 = vld [vmem:[#allocation8 + $0x10] sm:$0xff]   ;;  %v633_v62 = vld [vmem:[#allocation8 + $0x18] sm:$0xff]   ;;  %v634_v63 = vld [vmem:[#allocation8 + $0x20] sm:$0xff]   ;;  %s482_s29 = sshll.u32 %s768_s4, 4  ;;  %s483_s29 = int_to_ptr.vmem [resolvable:$true] %s482_s29 }
  0x51   :  { %549 = vmatprep.subr.bf16.mxu0 %v766_v0  ;;  %568 = vmatpush3.bf16.msra.mxu1 %v623_v11  ;;  %v635_v1 = vld [vmem:[#allocation8 + $0x28] sm:$0xff]   ;;  %v636_v2 = vld [vmem:[#allocation8 + $0x30] sm:$0xff]   ;;  %s730_s17 = scalar_lea.vmem %s483_s29, 128  ;;  %p735_p5 = scmp.lt.s32.totalorder %s483_s29, %s483_s29 }
  0x52   :  { %569 = vmatprep.subr.bf16.mxu1 %v766_v0  ;;  %p731_p4 = scmp.ne.s32.totalorder %s483_s29, %s730_s17  ;;  %p736_p6 = scmp.lt.s32.totalorder %s730_s17, %s730_s17 }
  0x54   :  { %550 = vmatpush3.bf16.msra.mxu0 %v616_v3  ;;  %v637_v3 = vld [vmem:[#allocation8 + $0x38] sm:$0xff]   ;;  %p737_p7 = por %p736_p6, %p735_p5 }
  0x55   :  { %551 = vmatprep.subr.bf16.mxu0 %v766_v0  ;;  %570 = vmatpush3.bf16.msra.mxu1 %v624_v12 }
  0x56   :  { %571 = vmatprep.subr.bf16.mxu1 %v766_v0  ;;  %p738_p8 = pnand %p737_p7, %p731_p4 }
  0x58   :  { %552 = vmatpush3.bf16.msra.mxu0 %v617_v4 }
  0x59   :  { %553 = vmatprep.subr.bf16.mxu0 %v766_v0  ;;  %572 = vmatpush3.bf16.msra.mxu1 %v625_v13 }
  0x5a   :  { %573 = vmatprep.subr.bf16.mxu1 %v766_v0 }
  0x5c   :  { %554 = vmatpush3.bf16.msra.mxu0 %v618_v5 }
  0x5d   :  { %555 = vmatprep.subr.bf16.mxu0 %v766_v0  ;;  %574 = vmatpush3.bf16.msra.mxu1 %v626_v14 }
  0x5e   :  { %575 = vmatprep.subr.bf16.mxu1 %v766_v0 }
  0x60   :  { %556 = vmatpush3.bf16.msra.mxu0 %v619_v6 }
  0x61   :  { %557 = vmatprep.subr.bf16.mxu0 %v766_v0  ;;  %576 = vmatpush3.bf16.msra.mxu1 %v627_v15 }
  0x62   :  { %577 = vmatprep.subr.bf16.mxu1 %v766_v0 }
  0x64   :  { %558 = vmatpush3.bf16.msra.mxu0 %v620_v7 }
  0x65   :  { %559 = vmatprep.subr.bf16.mxu0 %v766_v0  ;;  %578 = vmatpush3.bf16.msra.mxu1 %v628_v16 }
  0x66   :  { %579 = vmatprep.subr.bf16.mxu1 %v766_v0 }
  0x68   :  { %560 = vmatpush3.bf16.msra.mxu0 %v621_v8 }
  0x69   :  { %585 = vmatprep.subr.bf16.mxu0 %v766_v0  ;;  %580 = vmatpush3.bf16.msra.mxu1 %v629_v17 }
  0x6b   :  { %562 = vmatmul.mubr.bf16.vlgmr.msra.gmra.mrb[0].mxu0 %v76_v9 }
  0x6c   :  { %601 = vmatprep.mubr.msk.bf16.mxu0 %vm767_vm0, %v766_v0  ;;  %586 = vmatpush3.bf16.msra.mxu0 %v630_v59 }
  0x6d   :  { %587 = vmatprep.subr.bf16.mxu0 %v766_v0 }
  0x70   :  { %588 = vmatpush3.bf16.msra.mxu0 %v631_v60 }
  0x71   :  { %589 = vmatprep.subr.bf16.mxu0 %v766_v0 }
  0x74   :  { %590 = vmatpush3.bf16.msra.mxu0 %v632_v61 }
  0x75   :  { %591 = vmatprep.subr.bf16.mxu0 %v766_v0 }
  0x78   :  { %592 = vmatpush3.bf16.msra.mxu0 %v633_v62 }
  0x79   :  { %593 = vmatprep.subr.bf16.mxu0 %v766_v0 }
  0x7c   :  { %594 = vmatpush3.bf16.msra.mxu0 %v634_v63 }
  0x7d   :  { %595 = vmatprep.subr.bf16.mxu0 %v766_v0 }
  0x80   :  { %596 = vmatpush3.bf16.msra.mxu0 %v635_v1 }
  0x81   :  { %597 = vmatprep.subr.bf16.mxu0 %v766_v0 }
  0x84   :  { %598 = vmatpush3.bf16.msra.mxu0 %v636_v2 }
  0x85   :  { %599 = vmatprep.subr.bf16.mxu0 %v766_v0 }
  0x88   :  { %600 = vmatpush3.bf16.msra.mxu0 %v637_v3 }
 0x13e   :  { %v175_v18 = vpop.f32.mrb[0].mxu0 }
 0x13f   :  { %v181_v19 = vrot.slane %v175_v18, 4  ;;  %v187_v20 = vmul.f32 %v175_v18, %v175_v18  ;;  %v563_v21 = vpop.f32.mrb[1].mxu0 }
 0x140   :  { %v178_v22 = vpop.f32.mrb[2].mxu0 }
 0x141   :  { %v182_v23 = vadd.f32 %v181_v19, %v175_v18  ;;  %v188_v24 = vrot.slane %v187_v20, 4  ;;  %v564_v25 = vpop.f32.mrb[3].mxu0 }
 0x143   :  { %v183_v26 = vrot.slane %v182_v23, 2  ;;  %v189_v27 = vadd.f32 %v188_v24, %v187_v20 }
 0x145   :  { %v184_v28 = vadd.f32 %v183_v26, %v182_v23  ;;  %v190_v29 = vrot.slane %v189_v27, 2 }
 0x147   :  { %v185_v30 = vrot.slane %v184_v28, 1  ;;  %v191_v31 = vadd.f32 %v190_v29, %v189_v27 }
 0x149   :  { %v186_v32 = vadd.f32 %v185_v30, %v184_v28  ;;  %v192_v33 = vrot.slane %v191_v31, 1  ;;  %v357_v28 = vsub.s32 2, %v879_v42 }
 0x14b   :  { %v193_v34 = vadd.f32 %v192_v33, %v191_v31  ;;  %v194_v35 = vmul.f32 0.16666667, %v186_v32  ;;  %v362_v32 = vsub.s32 3, %v879_v42 }
 0x14d   :  { %v195_v36 = vmul.f32 0.16666667, %v193_v34  ;;  %v196_v37 = vmul.f32 %v194_v35, %v194_v35 }
 0x14f   :  { %v197_v38 = vsub.f32 %v195_v36, %v196_v37 }
 0x151   :  { %v198_v39 = vmax.f32 %v197_v38, 0.0 }
 0x153   :  { %v199_v40 = vadd.f32 1e-05, %v198_v39  ;;  %v385_v39 = vsub.s32 4, %v879_v42 }
 0x155   :  { %638 = vrsqrt.f32 %v199_v40  ;;  %v386_v40 = vrot.slane %v884_v43, %v385_v39 }
 0x15f   :  { %v639_v44 = vpop.eup %638 }
 0x160   :  { %v201_v45 = vmul.f32 %v639_v44, %v884_v43 }
 0x162   :  { %v202_v47 = vmul.f32 %v201_v45, %v194_v35  ;;  %v210_v49 = vrot.slane %v201_v45, %v209_v46 }
 0x164   :  { %v204_v48 = vrot.slane %v202_v47, 7  ;;  %v211_v52 = vmul.f32 %v210_v49, %v175_v18 }
 0x166   :  { %v206_v51 = vsub.f32 %v884_v43, %v204_v48 }
 0x168   :  { %v215_v53 = vrot.slane %v206_v51, %v214_v50 }
 0x16a   :  { %v216_v54 = vadd.f32 %v215_v53, %v211_v52 }
 0x16c   :  { %v217_v56 = vmax.f32 %v216_v54, 0.0 }
 0x16e   :  { %v223_v57 = vmul.f32 %v501_v55, %v217_v56 }
 0x170   :  { %v224_v58 = vpack.c.bf16 %v223_v57, %v223_v57 }
 0x172   :  { %582 = vmatmul.mubr.bf16.vlgmr.msra.gmra.mrb[0].mxu1 %v224_v58 }
 0x245   :  { %v323_v4 = vpop.f32.mrb[0].mxu1 }
 0x246   :  { %v329_v5 = vrot.slane %v323_v4, 4  ;;  %v335_v6 = vmul.f32 %v323_v4, %v323_v4  ;;  %v583_v7 = vpop.f32.mrb[1].mxu1 }
 0x247   :  { %v326_v8 = vpop.f32.mrb[2].mxu1 }
 0x248   :  { %v330_v9 = vadd.f32 %v329_v5, %v323_v4  ;;  %v336_v10 = vrot.slane %v335_v6, 4  ;;  %v584_v11 = vpop.f32.mrb[3].mxu1 }
 0x24a   :  { %v331_v12 = vrot.slane %v330_v9, 2  ;;  %v337_v13 = vadd.f32 %v336_v10, %v335_v6 }
 0x24c   :  { %v332_v14 = vadd.f32 %v331_v12, %v330_v9  ;;  %v338_v15 = vrot.slane %v337_v13, 2 }
 0x24e   :  { %v333_v16 = vrot.slane %v332_v14, 1  ;;  %v339_v17 = vadd.f32 %v338_v15, %v337_v13 }
 0x250   :  { %v334_v18 = vadd.f32 %v333_v16, %v332_v14  ;;  %v340_v19 = vrot.slane %v339_v17, 1 }
 0x252   :  { %v341_v20 = vadd.f32 %v340_v19, %v339_v17  ;;  %v342_v0 = vmul.f32 0.16666667, %v334_v18 }
 0x254   :  { %v343_v21 = vmul.f32 0.16666667, %v341_v20  ;;  %v344_v22 = vmul.f32 %v342_v0, %v342_v0 }
 0x256   :  { %v345_v23 = vsub.f32 %v343_v21, %v344_v22 }
 0x258   :  { %v346_v24 = vmax.f32 %v345_v23, 0.0 }
 0x25a   :  { %v347_v25 = vadd.f32 1e-05, %v346_v24 }
 0x25c   :  { %640 = vrsqrt.f32 %v347_v25 }
 0x266   :  { %v641_v26 = vpop.eup %640 }
 0x267   :  { %v349_v27 = vmul.f32 %v641_v26, %v884_v43 }
 0x269   :  { %v350_v29 = vmul.f32 %v349_v27, %v342_v0  ;;  %v358_v31 = vrot.slane %v349_v27, %v357_v28 }
 0x26b   :  { %v352_v30 = vrot.slane %v350_v29, 7  ;;  %v359_v34 = vmul.f32 %v358_v31, %v323_v4 }
 0x26d   :  { %v354_v33 = vsub.f32 %v884_v43, %v352_v30 }
 0x26f   :  { %v363_v35 = vrot.slane %v354_v33, %v362_v32 }
 0x271   :  { %v364_v36 = vadd.f32 %v363_v35, %v359_v34 }
 0x273   :  { %v365_v37 = vmax.f32 %v364_v36, 0.0 }
 0x275   :  { %v366_v38 = vpack.c.bf16 %v365_v37, %v365_v37 }
 0x277   :  { %602 = vmatmul.mubr.bf16.vlgmr.msra.gmra.mrb[4].mxu0 %v366_v38 }
 0x34a   :  { %v469_v41 = vpop.f32.mrb[4].mxu0 }
 0x34b   :  { %v470_v44 = vadd.f32 %v469_v41, %v386_v40  ;;  %v603_v45 = vpop.f32.mrb[5].mxu0 }
 0x34c   :  { %v472_v46 = vpop.f32.mrb[6].mxu0 }
 0x34d   :  { %475 = vst [vmem:[#allocation10] sm:$0xff] %v470_v44  ;;  %v604_v47 = vpop.f32.mrb[7].mxu0 }
 0x34e   :  { %741 = shalt.err (!%p738_p8)
}
 0x34f   :  { %s742_s19 = scalar_lea.hbm %s922_s5, 128 }
 0x350   :  { %p743_p9 = scmp.ne.s32.totalorder %s922_s5, %s742_s19  ;;  %p746_p10 = scmp.lt.u32.totalorder %s742_s19, %s922_s5 }
 0x352   :  { %p748_p11 = pnand %p746_p10, %p743_p9 }
 0x354   :  { %751 = shalt.err (!%p748_p11)
}
 0x355   :  { %485 = dma.vmem_to_hbm [thread:$0]  %s483_s29, 128, %s922_s5, [#allocation4]  }
 0x356   :  { %758 = dma.done.wait [#allocation4], 128  }
 0x357   :  { %759 = vsyncadd [#allocation4], 4294967168 }
 0x358   :  { %489 = vsyncpa [#allocation3], 1 }
 0x359   :  { %490 = vsyncpa [#allocation6], 1 }
 0x35a   :  { %491 = vsyncpa [#allocation9], 1 }
 0x35b   :  { %492 = vsyncpa [#allocation4], 1 }

</bundles_post_ra>
